<compile_context>
chip_gen: v6e
topology: v6e:2x2x1
jax: 0.10.0
libtpu: 0.0.40
codegen_flags: <defaults>
</compile_context>

<pallas_src>
import jax
import jax.numpy as jnp
from jax.experimental import pallas as pl
from jax.experimental.pallas import tpu as pltpu

IGNORE_INDEX = -100


def _mixup_ce_kernel(lamb_ref, preds_ref, l1_ref, l2_ref, out_ref,
                     nll1_ref, cnt1_ref, nll2_ref, cnt2_ref):
    i = pl.program_id(0)

    @pl.when(i == 0)
    def _init():
        nll1_ref[...] = jnp.zeros_like(nll1_ref)
        cnt1_ref[...] = jnp.zeros_like(cnt1_ref)
        nll2_ref[...] = jnp.zeros_like(nll2_ref)
        cnt2_ref[...] = jnp.zeros_like(cnt2_ref)

    x = preds_ref[...].astype(jnp.float32)                       # (TM, C)
    tm, c = x.shape

    # Numerically-stable log-sum-exp along the class (lane) axis.
    m = jnp.max(x, axis=-1, keepdims=True)                       # (TM, 1)
    lse = m + jnp.log(jnp.sum(jnp.exp(x - m), axis=-1, keepdims=True))

    col = jax.lax.broadcasted_iota(jnp.int32, (tm, c), 1)        # class index per lane

    def partial_sums(labels):                                    # labels: (TM, 1) i32
        picked = jnp.sum(jnp.where(col == labels, x, 0.0),
                         axis=-1, keepdims=True)                 # logit at label
        valid = (labels != IGNORE_INDEX).astype(jnp.float32)     # (TM, 1)
        nll = (lse - picked) * valid                             # -log_softmax at label
        return (jnp.sum(nll, axis=0, keepdims=True),             # (1, 1)
                jnp.sum(valid, axis=0, keepdims=True))           # (1, 1)

    n1, v1 = partial_sums(l1_ref[...])
    n2, v2 = partial_sums(l2_ref[...])

    nll1_ref[...] += n1
    cnt1_ref[...] += v1
    nll2_ref[...] += n2
    cnt2_ref[...] += v2

    @pl.when(i == pl.num_programs(0) - 1)
    def _finalize():
        lamb = lamb_ref[0]
        loss1 = nll1_ref[...] / cnt1_ref[...]
        loss2 = nll2_ref[...] / cnt2_ref[...]
        out_ref[...] = lamb * loss1 + (1.0 - lamb) * loss2


def mixup_crossentropy(preds, labels1, labels2, lamb: float, *, tm=None):
    """preds: (N, C) float (any dtype); labels1/labels2: (N,) int; lamb: python float."""
    if lamb < 0 or 1.0 < lamb:
        raise ValueError('lamb must be 0 <= lamb <= 1')
    n, c = preds.shape
    itemsize = jnp.dtype(preds.dtype).itemsize

    if tm is None:
        # ~2 MiB preds tile: double-buffered it stays well inside the scoped
        # VMEM limit on every TPU generation (v5e 16 MiB default, v7x 32/64 MiB).
        tm = max(8, (2 * 1024 * 1024) // max(1, c * itemsize))
        tm = min(tm, 1024)
    tm = max(8, (int(tm) // 8) * 8)
    tm = min(tm, ((n + 7) // 8) * 8)          # never bigger than the batch
    n_pad = pl.cdiv(n, tm) * tm
    num_tiles = n_pad // tm

    l1 = labels1.astype(jnp.int32).reshape(n, 1)
    l2 = labels2.astype(jnp.int32).reshape(n, 1)
    if n_pad != n:
        pad = n_pad - n
        preds = jnp.pad(preds, ((0, pad), (0, 0)))
        l1 = jnp.pad(l1, ((0, pad), (0, 0)), constant_values=IGNORE_INDEX)
        l2 = jnp.pad(l2, ((0, pad), (0, 0)), constant_values=IGNORE_INDEX)

    lamb_arr = jnp.asarray([lamb], dtype=jnp.float32)

    cost = pl.CostEstimate(
        flops=int(10 * n_pad * c),
        transcendentals=int(n_pad * c),
        bytes_accessed=int(n_pad * c * itemsize + 2 * n_pad * 4 + 8),
    )

    out = pl.pallas_call(
        _mixup_ce_kernel,
        out_shape=jax.ShapeDtypeStruct((1, 1), jnp.float32),
        grid=(num_tiles,),
        in_specs=[
            pl.BlockSpec(memory_space=pltpu.SMEM),          # lamb scalar (1,)
            pl.BlockSpec((tm, c), lambda i: (i, 0)),        # preds tile
            pl.BlockSpec((tm, 1), lambda i: (i, 0)),        # labels1 tile
            pl.BlockSpec((tm, 1), lambda i: (i, 0)),        # labels2 tile
        ],
        out_specs=pl.BlockSpec((1, 1), lambda i: (0, 0)),   # scalar loss
        scratch_shapes=[pltpu.VMEM((1, 1), jnp.float32)] * 4,
        compiler_params=pltpu.CompilerParams(
            dimension_semantics=("arbitrary",),
            vmem_limit_bytes=32 * 1024 * 1024,
        ),
        cost_estimate=cost,
    )(lamb_arr, preds, l1, l2)
    return out[0, 0]


def _reference(preds, labels1, labels2, lamb):
    logp = jax.nn.log_softmax(preds.astype(jnp.float32), axis=-1)

    def ce(labels):
        valid = labels != IGNORE_INDEX
        safe = jnp.where(valid, labels, 0)
        nll = -jnp.take_along_axis(logp, safe[:, None], axis=-1)[:, 0]
        nll = jnp.where(valid, nll, 0.0)
        return jnp.sum(nll) / jnp.sum(valid.astype(jnp.float32))

    return lamb * ce(labels1) + (1.0 - lamb) * ce(labels2)


if __name__ == "__main__":
    key = jax.random.PRNGKey(0)
    k1, k2, k3 = jax.random.split(key, 3)

    N, C = 20, 128
    preds = jax.random.normal(k1, (N, C), dtype=jnp.float32)
    labels1 = jax.random.randint(k2, (N,), 0, C, dtype=jnp.int32)
    labels2 = jax.random.randint(k3, (N,), 0, C, dtype=jnp.int32)
    labels2 = labels2.at[3].set(IGNORE_INDEX)   # exercise ignore_index masking
    lamb = 0.3

    # tm=8 -> grid of 3 tiles (with padding of the last one) so the
    # init / accumulate / finalize pipeline path is exercised.
    loss = mixup_crossentropy(preds, labels1, labels2, lamb, tm=8)
    jax.block_until_ready(loss)

    ref = _reference(preds, labels1, labels2, lamb)
    assert jnp.allclose(loss, ref, rtol=1e-5, atol=1e-5), (loss, ref)

    print("KERNEL_OK")
</pallas_src>

<mosaic_0001>
module attributes {stable_mosaic.version = 11 : i64} {
  func.func @_mixup_ce_kernel(%arg0: i32, %arg1: memref<1xf32, #tpu.memory_space<smem>>, %arg2: memref<8x128xf32, #tpu.memory_space<vmem>>, %arg3: memref<8x1xi32, #tpu.memory_space<vmem>>, %arg4: memref<8x1xi32, #tpu.memory_space<vmem>>, %arg5: memref<1x1xf32, #tpu.memory_space<vmem>>, %arg6: memref<1x1xf32, #tpu.memory_space<vmem>>, %arg7: memref<1x1xf32, #tpu.memory_space<vmem>>, %arg8: memref<1x1xf32, #tpu.memory_space<vmem>>, %arg9: memref<1x1xf32, #tpu.memory_space<vmem>>) attributes {dimension_semantics = [#tpu.dimension_semantics<arbitrary>], iteration_bounds = array<i64: 3>, scalar_prefetch = 0 : i64, scratch_operands = 4 : i64, tpu.core_type = #tpu.core_type<tc>, window_params = [{transform_indices = @transform_0, window_bounds = array<i64: 1>}, {transform_indices = @transform_1, window_bounds = array<i64: 8, 128>}, {transform_indices = @transform_2, window_bounds = array<i64: 8, 1>}, {transform_indices = @transform_3, window_bounds = array<i64: 8, 1>}, {pipeline_mode = #tpu.pipeline_mode<synchronous>, transform_indices = @transform_4, window_bounds = array<i64: 1, 1>}]} {
    %c0_i32 = arith.constant 0 : i32
    %0 = arith.cmpi eq, %arg0, %c0_i32 : i32
    %1 = arith.extui %0 : i1 to i32
    %c0_i32_0 = arith.constant 0 : i32
    %2 = arith.cmpi ne, %1, %c0_i32_0 : i32
    scf.if %2 {
      %cst_33 = arith.constant 0.000000e+00 : f32
      %63 = vector.broadcast %cst_33 : f32 to vector<1x1xf32>
      %c0_34 = arith.constant 0 : index
      %c0_35 = arith.constant 0 : index
      %64 = vector.load %arg6[%c0_34, %c0_35] : memref<1x1xf32, #tpu.memory_space<vmem>>, vector<1x1xf32>
      tpu.vector_store %arg6[%c0_34, %c0_35], %63 {strides = array<i32>} : memref<1x1xf32, #tpu.memory_space<vmem>>, vector<1x1xf32>,
      %cst_36 = arith.constant 0.000000e+00 : f32
      %65 = vector.broadcast %cst_36 : f32 to vector<1x1xf32>
      %c0_37 = arith.constant 0 : index
      %c0_38 = arith.constant 0 : index
      %66 = vector.load %arg7[%c0_37, %c0_38] : memref<1x1xf32, #tpu.memory_space<vmem>>, vector<1x1xf32>
      tpu.vector_store %arg7[%c0_37, %c0_38], %65 {strides = array<i32>} : memref<1x1xf32, #tpu.memory_space<vmem>>, vector<1x1xf32>,
      %cst_39 = arith.constant 0.000000e+00 : f32
      %67 = vector.broadcast %cst_39 : f32 to vector<1x1xf32>
      %c0_40 = arith.constant 0 : index
      %c0_41 = arith.constant 0 : index
      %68 = vector.load %arg8[%c0_40, %c0_41] : memref<1x1xf32, #tpu.memory_space<vmem>>, vector<1x1xf32>
      tpu.vector_store %arg8[%c0_40, %c0_41], %67 {strides = array<i32>} : memref<1x1xf32, #tpu.memory_space<vmem>>, vector<1x1xf32>,
      %cst_42 = arith.constant 0.000000e+00 : f32
      %69 = vector.broadcast %cst_42 : f32 to vector<1x1xf32>
      %c0_43 = arith.constant 0 : index
      %c0_44 = arith.constant 0 : index
      %70 = vector.load %arg9[%c0_43, %c0_44] : memref<1x1xf32, #tpu.memory_space<vmem>>, vector<1x1xf32>
      tpu.vector_store %arg9[%c0_43, %c0_44], %69 {strides = array<i32>} : memref<1x1xf32, #tpu.memory_space<vmem>>, vector<1x1xf32>,
    } else {
    }
    %c0 = arith.constant 0 : index
    %c0_1 = arith.constant 0 : index
    %3 = vector.load %arg2[%c0, %c0_1] : memref<8x128xf32, #tpu.memory_space<vmem>>, vector<8x128xf32>
    %cst = arith.constant dense<0xFF800000> : vector<8xf32>
    %4 = vector.multi_reduction <maximumf>, %3, %cst [1] : vector<8x128xf32> to vector<8xf32>
    %5 = vector.shape_cast %4 : vector<8xf32> to vector<8x1xf32>
    %6 = vector.broadcast %5 : vector<8x1xf32> to vector<8x128xf32>
    %7 = arith.subf %3, %6 : vector<8x128xf32>
    %8 = math.exp %7 : vector<8x128xf32>
    %cst_2 = arith.constant dense<0.000000e+00> : vector<8xf32>
    %9 = vector.multi_reduction <add>, %8, %cst_2 [1] : vector<8x128xf32> to vector<8xf32>
    %10 = vector.shape_cast %9 : vector<8xf32> to vector<8x1xf32>
    %11 = math.log %10 : vector<8x1xf32>
    %12 = arith.addf %5, %11 : vector<8x1xf32>
    %13 = tpu.iota {dimensions = array<i32: 1>} : vector<8x128xi32>
    %c0_3 = arith.constant 0 : index
    %c0_4 = arith.constant 0 : index
    %14 = vector.load %arg3[%c0_3, %c0_4] : memref<8x1xi32, #tpu.memory_space<vmem>>, vector<8x1xi32>
    %15 = vector.broadcast %14 : vector<8x1xi32> to vector<8x128xi32>
    %16 = arith.cmpi eq, %13, %15 : vector<8x128xi32>
    %cst_5 = arith.constant 0.000000e+00 : f32
    %17 = vector.broadcast %cst_5 : f32 to vector<8x128xf32>
    %18 = arith.select %16, %3, %17 : vector<8x128xi1>, vector<8x128xf32>
    %cst_6 = arith.constant dense<0.000000e+00> : vector<8xf32>
    %19 = vector.multi_reduction <add>, %18, %cst_6 [1] : vector<8x128xf32> to vector<8xf32>
    %20 = vector.shape_cast %19 : vector<8xf32> to vector<8x1xf32>
    %c-100_i32 = arith.constant -100 : i32
    %21 = vector.broadcast %c-100_i32 : i32 to vector<8x1xi32>
    %22 = arith.cmpi ne, %14, %21 : vector<8x1xi32>
    %23 = arith.extui %22 : vector<8x1xi1> to vector<8x1xi32>
    %24 = arith.sitofp %23 : vector<8x1xi32> to vector<8x1xf32>
    %25 = arith.subf %12, %20 : vector<8x1xf32>
    %26 = arith.mulf %25, %24 : vector<8x1xf32>
    %cst_7 = arith.constant dense<0.000000e+00> : vector<1xf32>
    %27 = vector.multi_reduction <add>, %26, %cst_7 [0] : vector<8x1xf32> to vector<1xf32>
    %28 = vector.shape_cast %27 : vector<1xf32> to vector<1x1xf32>
    %cst_8 = arith.constant dense<0.000000e+00> : vector<1xf32>
    %29 = vector.multi_reduction <add>, %24, %cst_8 [0] : vector<8x1xf32> to vector<1xf32>
    %30 = vector.shape_cast %29 : vector<1xf32> to vector<1x1xf32>
    %c0_9 = arith.constant 0 : index
    %c0_10 = arith.constant 0 : index
    %31 = vector.load %arg4[%c0_9, %c0_10] : memref<8x1xi32, #tpu.memory_space<vmem>>, vector<8x1xi32>
    %32 = vector.broadcast %31 : vector<8x1xi32> to vector<8x128xi32>
    %33 = arith.cmpi eq, %13, %32 : vector<8x128xi32>
    %cst_11 = arith.constant 0.000000e+00 : f32
    %34 = vector.broadcast %cst_11 : f32 to vector<8x128xf32>
    %35 = arith.select %33, %3, %34 : vector<8x128xi1>, vector<8x128xf32>
    %cst_12 = arith.constant dense<0.000000e+00> : vector<8xf32>
    %36 = vector.multi_reduction <add>, %35, %cst_12 [1] : vector<8x128xf32> to vector<8xf32>
    %37 = vector.shape_cast %36 : vector<8xf32> to vector<8x1xf32>
    %c-100_i32_13 = arith.constant -100 : i32
    %38 = vector.broadcast %c-100_i32_13 : i32 to vector<8x1xi32>
    %39 = arith.cmpi ne, %31, %38 : vector<8x1xi32>
    %40 = arith.extui %39 : vector<8x1xi1> to vector<8x1xi32>
    %41 = arith.sitofp %40 : vector<8x1xi32> to vector<8x1xf32>
    %42 = arith.subf %12, %37 : vector<8x1xf32>
    %43 = arith.mulf %42, %41 : vector<8x1xf32>
    %cst_14 = arith.constant dense<0.000000e+00> : vector<1xf32>
    %44 = vector.multi_reduction <add>, %43, %cst_14 [0] : vector<8x1xf32> to vector<1xf32>
    %45 = vector.shape_cast %44 : vector<1xf32> to vector<1x1xf32>
    %cst_15 = arith.constant dense<0.000000e+00> : vector<1xf32>
    %46 = vector.multi_reduction <add>, %41, %cst_15 [0] : vector<8x1xf32> to vector<1xf32>
    %47 = vector.shape_cast %46 : vector<1xf32> to vector<1x1xf32>
    %c0_16 = arith.constant 0 : index
    %c0_17 = arith.constant 0 : index
    %48 = vector.load %arg6[%c0_16, %c0_17] : memref<1x1xf32, #tpu.memory_space<vmem>>, vector<1x1xf32>
    %49 = arith.addf %48, %28 : vector<1x1xf32>
    %c0_18 = arith.constant 0 : index
    %c0_19 = arith.constant 0 : index
    %50 = vector.load %arg6[%c0_18, %c0_19] : memref<1x1xf32, #tpu.memory_space<vmem>>, vector<1x1xf32>
    tpu.vector_store %arg6[%c0_18, %c0_19], %49 {strides = array<i32>} : memref<1x1xf32, #tpu.memory_space<vmem>>, vector<1x1xf32>,
    %c0_20 = arith.constant 0 : index
    %c0_21 = arith.constant 0 : index
    %51 = vector.load %arg7[%c0_20, %c0_21] : memref<1x1xf32, #tpu.memory_space<vmem>>, vector<1x1xf32>
    %52 = arith.addf %51, %30 : vector<1x1xf32>
    %c0_22 = arith.constant 0 : index
    %c0_23 = arith.constant 0 : index
    %53 = vector.load %arg7[%c0_22, %c0_23] : memref<1x1xf32, #tpu.memory_space<vmem>>, vector<1x1xf32>
    tpu.vector_store %arg7[%c0_22, %c0_23], %52 {strides = array<i32>} : memref<1x1xf32, #tpu.memory_space<vmem>>, vector<1x1xf32>,
    %c0_24 = arith.constant 0 : index
    %c0_25 = arith.constant 0 : index
    %54 = vector.load %arg8[%c0_24, %c0_25] : memref<1x1xf32, #tpu.memory_space<vmem>>, vector<1x1xf32>
    %55 = arith.addf %54, %45 : vector<1x1xf32>
    %c0_26 = arith.constant 0 : index
    %c0_27 = arith.constant 0 : index
    %56 = vector.load %arg8[%c0_26, %c0_27] : memref<1x1xf32, #tpu.memory_space<vmem>>, vector<1x1xf32>
    tpu.vector_store %arg8[%c0_26, %c0_27], %55 {strides = array<i32>} : memref<1x1xf32, #tpu.memory_space<vmem>>, vector<1x1xf32>,
    %c0_28 = arith.constant 0 : index
    %c0_29 = arith.constant 0 : index
    %57 = vector.load %arg9[%c0_28, %c0_29] : memref<1x1xf32, #tpu.memory_space<vmem>>, vector<1x1xf32>
    %58 = arith.addf %57, %47 : vector<1x1xf32>
    %c0_30 = arith.constant 0 : index
    %c0_31 = arith.constant 0 : index
    %59 = vector.load %arg9[%c0_30, %c0_31] : memref<1x1xf32, #tpu.memory_space<vmem>>, vector<1x1xf32>
    tpu.vector_store %arg9[%c0_30, %c0_31], %58 {strides = array<i32>} : memref<1x1xf32, #tpu.memory_space<vmem>>, vector<1x1xf32>,
    %c2_i32 = arith.constant 2 : i32
    %60 = arith.cmpi eq, %arg0, %c2_i32 : i32
    %61 = arith.extui %60 : i1 to i32
    %c0_i32_32 = arith.constant 0 : i32
    %62 = arith.cmpi ne, %61, %c0_i32_32 : i32
    scf.if %62 {
      %c0_33 = arith.constant 0 : index
      %63 = memref.load %arg1[%c0_33] : memref<1xf32, #tpu.memory_space<smem>>
      %c0_34 = arith.constant 0 : index
      %c0_35 = arith.constant 0 : index
      %64 = vector.load %arg6[%c0_34, %c0_35] : memref<1x1xf32, #tpu.memory_space<vmem>>, vector<1x1xf32>
      %c0_36 = arith.constant 0 : index
      %c0_37 = arith.constant 0 : index
      %65 = vector.load %arg7[%c0_36, %c0_37] : memref<1x1xf32, #tpu.memory_space<vmem>>, vector<1x1xf32>
      %66 = arith.divf %64, %65 : vector<1x1xf32>
      %c0_38 = arith.constant 0 : index
      %c0_39 = arith.constant 0 : index
      %67 = vector.load %arg8[%c0_38, %c0_39] : memref<1x1xf32, #tpu.memory_space<vmem>>, vector<1x1xf32>
      %c0_40 = arith.constant 0 : index
      %c0_41 = arith.constant 0 : index
      %68 = vector.load %arg9[%c0_40, %c0_41] : memref<1x1xf32, #tpu.memory_space<vmem>>, vector<1x1xf32>
      %69 = arith.divf %67, %68 : vector<1x1xf32>
      %70 = vector.broadcast %63 : f32 to vector<1x1xf32>
      %71 = arith.mulf %70, %66 : vector<1x1xf32>
      %cst_42 = arith.constant 1.000000e+00 : f32
      %72 = arith.subf %cst_42, %63 : f32
      %73 = vector.broadcast %72 : f32 to vector<1x1xf32>
      %74 = arith.mulf %73, %69 : vector<1x1xf32>
      %75 = arith.addf %71, %74 : vector<1x1xf32>
      %c0_43 = arith.constant 0 : index
      %c0_44 = arith.constant 0 : index
      %76 = vector.load %arg5[%c0_43, %c0_44] : memref<1x1xf32, #tpu.memory_space<vmem>>, vector<1x1xf32>
      tpu.vector_store %arg5[%c0_43, %c0_44], %75 {strides = array<i32>} : memref<1x1xf32, #tpu.memory_space<vmem>>, vector<1x1xf32>,
    } else {
    }
    return
  }
  func.func @transform_0(%arg0: i32) -> i32 {
    %c0_i32 = arith.constant 0 : i32
    %c0_i32_0 = arith.constant 0 : i32
    return %c0_i32 : i32
  }
  func.func @transform_1(%arg0: i32) -> (i32, i32) {
    %c0_i32 = arith.constant 0 : i32
    %c0_i32_0 = arith.constant 0 : i32
    return %arg0, %c0_i32 : i32, i32
  }
  func.func @transform_2(%arg0: i32) -> (i32, i32) {
    %c0_i32 = arith.constant 0 : i32
    %c0_i32_0 = arith.constant 0 : i32
    return %arg0, %c0_i32 : i32, i32
  }
  func.func @transform_3(%arg0: i32) -> (i32, i32) {
    %c0_i32 = arith.constant 0 : i32
    %c0_i32_0 = arith.constant 0 : i32
    return %arg0, %c0_i32 : i32, i32
  }
  func.func @transform_4(%arg0: i32) -> (i32, i32) {
    %c0_i32 = arith.constant 0 : i32
    %c0_i32_0 = arith.constant 0 : i32
    %c0_i32_1 = arith.constant 0 : i32
    return %c0_i32, %c0_i32_0 : i32, i32
  }
}

</mosaic_0001>

<bundles_post_ra>
// kernel: tpu_custom_call.1
= control target key start
LH: loop header
LB: loop body
LE: loop exit
PB: predicated region body
PF: predicated region fallthrough
CT: control target
= control target key end

     0   :  { %s564_s0 = inlined_call_operand.<no memory space> [shape: f32[1], index: 0, kind: input, shape index: {}]   ;;  %s565_s1 = inlined_call_operand.vmem [shape: f32[24,128], index: 1, kind: input, shape index: {}]   ;;  %s566_s2 = inlined_call_operand.vmem [shape: s32[24,1], index: 2, kind: input, shape index: {}]   ;;  %s567_s3 = inlined_call_operand.vmem [shape: s32[24,1], index: 3, kind: input, shape index: {}]   ;;  %s568_s4 = inlined_call_operand.hbm [shape: f32[1,1], index: 4, kind: output, shape index: {}]  }
   0x1   :  { %9 = sst [smem:[#allocation6]] %s564_s0 }
   0x2   :  { %10 = vsyncpa [#allocation8], 0  ;;  %s507_s17 = smov 0  }
   0x3 LB: > { %s513_s18 = sadd.s32 4294967295, %s473_s17   ;;  %p399_p0 = scmp.ge.s32.totalorder %s473_s17, 1  ;;  %s473_s17 = sphi %s507_s17, %s16_s17  }
   0x4   : > { %p176_p1 = scmp.lt.s32.totalorder %s473_s17, 4 }
   0x6   : > { %p177_p2 = pnand %p399_p0, %p176_p1 }
   0x7   : > { %p204_p3 = scmp.lt.s32.totalorder (!%p177_p2), %s513_s18, 2  ;;  %p403_p4 = scmp.ne.s32.totalorder (!%p177_p2), %s513_s18, 0 }
   0x8   : > { %180 = sbr.rel (%p177_p2) target bundleno = 393 (0x189), region = 36 }
   0xd   : > { %s205_s0 = scalar_select %p204_p3, %s513_s18, 2 }
   0xe   : > { %219 = sbr.rel (%p403_p4) target bundleno = 22 (0x16), region = 40 }
   0xf   : > { %s519_s19 = sshll.u32 %s205_s0, 3 }
  0x10   : > { %s207_s22 = scalar_lea.vmem %s565_s1, %s519_s19  ;;  %s211_s25 = scalar_lea.vmem %s566_s2, %s519_s19 }
  0x11   : > { %s215_s28 = scalar_lea.vmem %s567_s3, %s519_s19 }
  0x13   : > { %vm220_vm0 = vcmask 0   ;;  %v475_v0 = vmov 0.0  }
  0x14   : > { %221 = vst.msk [vmem:[#allocation2] sm:$0x1] %vm220_vm0, %v475_v0  ;;  %222 = vst.msk [vmem:[#allocation3] sm:$0x1] %vm220_vm0, %v475_v0 }
  0x15   : > { %223 = vst.msk [vmem:[#allocation4] sm:$0x1] %vm220_vm0, %v475_v0  ;;  %224 = vst.msk [vmem:[#allocation5] sm:$0x1] %vm220_vm0, %v475_v0 }
  0x16 PF: > { %v225_v1 = vld [vmem:[%s207_s22] sm:$0xff]  ;;  %vm251_vm1 = vcmask 7168   ;;  %v476_v3 = vmov 0   ;;  %v477_v4 = vmov 0.0   ;;  %vm295_vm3 = vcmask 0   ;;  %p406_p5 = scmp.ne.s32.totalorder %s513_s18, 2 }
  0x17   : > { %v266_v2 = vld [vmem:[%s215_s28] sm:$0xff]  ;;  %226 = vmax.xlane.f32.xlu0 %v225_v1  ;;  %430 = vset.pattern.permute.xlu1 %v476_v3  ;;  %v236_v19 = vlaneseq  ;;  %s310_s5 = sld [smem:[#allocation6]] (!%p406_p5) }
  0x18   : > { %vm274_vm2 = vcmp.ne.s32.totalorder %v266_v2, 4294967196  ;;  %429 = vset.pattern.permute.xlu0 %v476_v3  ;;  %268 = vperm.xlu1 %430, %v266_v2   ;;  %v238_v15 = vld [vmem:[%s211_s25] sm:$0xff] }
  0x19   : > { %v405_v5 = vsel %vm274_vm2, 1.0, %v477_v4  ;;  %v237_v20 = vand.u32 127, %v236_v19  ;;  %vm246_vm6 = vcmp.ne.s32.totalorder %v238_v15, 4294967196 }
  0x1a   : > { %v286_v6 = vsel %vm251_vm1, %v405_v5, 0.0  ;;  %v404_v26 = vsel %vm246_vm6, 1.0, %v477_v4 }
  0x1b   : > { %v287_v7 = vrot.slane %v286_v6, 4  ;;  %v259_v27 = vsel %vm251_vm1, %v404_v26, 0.0  ;;  %v297_v33 = vld [vmem:[#allocation3] sm:$0x1]  ;;  %v293_v58 = vld [vmem:[#allocation2] sm:$0x1] }
  0x1c   : > { %v303_v12 = vld [vmem:[#allocation5] sm:$0x1]  ;;  %v260_v28 = vrot.slane %v259_v27, 4  ;;  %v300_v59 = vld [vmem:[#allocation4] sm:$0x1] }
  0x1d   : > { %v288_v8 = vadd.f32 %v287_v7, %v286_v6  ;;  %s321_s6 = ssub.f32 (!%p406_p5), 1.0, %s310_s5 }
  0x1e   : > { %v261_v29 = vadd.f32 %v260_v28, %v259_v27 }
  0x1f   : > { %v289_v9 = vrot.slane %v288_v8, 2 }
  0x20   : > { %v262_v30 = vrot.slane %v261_v29, 2 }
  0x21   : > { %v290_v10 = vadd.f32 %v289_v9, %v288_v8 }
  0x22   : > { %v263_v31 = vadd.f32 %v262_v30, %v261_v29 }
  0x23   : > { %v291_v11 = vrot.slane %v290_v10, 1 }
  0x24   : > { %v264_v32 = vrot.slane %v263_v31, 1 }
  0x25   : > { %v292_v13 = vadd.f32 %v291_v11, %v290_v10 }
  0x26   : > { %v265_v34 = vadd.f32 %v264_v32, %v263_v31 }
  0x27   : > { %v304_v14 = vadd.f32 %v303_v12, %v292_v13 }
  0x28   : > { %v298_v35 = vadd.f32 %v297_v33, %v265_v34 }
  0x29   : > { %305 = vst.msk [vmem:[#allocation5] sm:$0x1] %vm295_vm3, %v304_v14 }
  0x2a   : > { %299 = vst.msk [vmem:[#allocation3] sm:$0x1] %vm295_vm3, %v298_v35 }
  0x2d   : > { %240 = vperm.xlu0 %429, %v238_v15  }
  0x93   : > { %v269_v23 = vpop.permute.xlu1 %268 }
  0x94   : > { %vm270_vm5 = vcmp.eq.s32.totalorder %v237_v20, %v269_v23 }
  0x95   : > { %v271_v25 = vsel %vm270_vm5, %v225_v1, 0.0 }
  0xa0   : > { %v227_v16 = vpop.xlane.xlu0 %226 }
  0xa1   : > { %v228_v17 = vsub.f32 %v225_v1, %v227_v16 }
  0xa3   : > { %v229_v18 = vmul.f32 1.442695, %v228_v17 }
  0xa5   : > { %431 = vpow2.f32 %v229_v18 }
  0xa8   : > { %v241_v21 = vpop.permute.xlu0 %240 }
  0xa9   : > { %vm242_vm4 = vcmp.eq.s32.totalorder %v237_v20, %v241_v21 }
  0xaa   : > { %v243_v24 = vsel %vm242_vm4, %v225_v1, 0.0 }
  0xb2   : > { %v432_v22 = vpop.eup %431 }
  0xb3   : > { %231 = vadd.xlane.f32.xlu1 %v432_v22 }
  0xb7   : > { %244 = vadd.xlane.f32.xlu1 %v243_v24 }
  0xbb   : > { %272 = vadd.xlane.f32.xlu1 %v271_v25 }
 0x13c   : > { %v232_v36 = vpop.xlane.xlu1 %231 }
 0x13d   : > { %433 = vlog2.f32 %v232_v36 }
 0x140   : > { %v245_v37 = vpop.xlane.xlu1 %244 }
 0x144   : > { %v273_v40 = vpop.xlane.xlu1 %272 }
 0x14a   : > { %v434_v38 = vpop.eup %433 }
 0x14b   : > { %v234_v39 = vmul.f32 0.6931472, %v434_v38 }
 0x14d   : > { %v235_v41 = vadd.f32 %v234_v39, %v227_v16 }
 0x14f   : > { %v249_v42 = vsub.f32 %v235_v41, %v245_v37  ;;  %v277_v43 = vsub.f32 %v235_v41, %v273_v40 }
 0x151   : > { %v250_v44 = vmul.f32 %v404_v26, %v249_v42  ;;  %v278_v45 = vmul.f32 %v405_v5, %v277_v43 }
 0x153   : > { %v252_v46 = vsel %vm251_vm1, %v250_v44, 0.0  ;;  %v279_v47 = vsel %vm251_vm1, %v278_v45, 0.0 }
 0x154   : > { %v253_v48 = vrot.slane %v252_v46, 4  ;;  %v280_v49 = vrot.slane %v279_v47, 4 }
 0x156   : > { %v254_v50 = vadd.f32 %v253_v48, %v252_v46  ;;  %v281_v51 = vadd.f32 %v280_v49, %v279_v47 }
 0x158   : > { %v255_v52 = vrot.slane %v254_v50, 2  ;;  %v282_v53 = vrot.slane %v281_v51, 2 }
 0x15a   : > { %v256_v54 = vadd.f32 %v255_v52, %v254_v50  ;;  %v283_v55 = vadd.f32 %v282_v53, %v281_v51 }
 0x15c   : > { %v257_v56 = vrot.slane %v256_v54, 1  ;;  %v284_v57 = vrot.slane %v283_v55, 1 }
 0x15e   : > { %v258_v60 = vadd.f32 %v257_v56, %v256_v54  ;;  %v285_v61 = vadd.f32 %v284_v57, %v283_v55  ;;  %309 = sbr.rel (%p406_p5) target bundleno = 378 (0x17a), region = 44 }
 0x160   : > { %v294_v62 = vadd.f32 %v293_v58, %v258_v60  ;;  %v301_v63 = vadd.f32 %v300_v59, %v285_v61 }
 0x162   : > { %296 = vst.msk [vmem:[#allocation2] sm:$0x1] %vm295_vm3, %v294_v62  ;;  %302 = vst.msk [vmem:[#allocation4] sm:$0x1] %vm295_vm3, %v301_v63 }
 0x163   : > { %v312_v0 = vld [vmem:[#allocation3] sm:$0x1]  ;;  %v316_v1 = vld [vmem:[#allocation5] sm:$0x1]  ;;  %v319_v5 = vstv %s310_s5  ;;  %v322_v8 = vstv %s321_s6 }
 0x164   : > { %435 = vrcp.f32 %v312_v0 }
 0x165   : > { %437 = vrcp.f32 %v316_v1 }
 0x169   : > { %v311_v2 = vld [vmem:[#allocation2] sm:$0x1]  ;;  %v315_v3 = vld [vmem:[#allocation4] sm:$0x1] }
 0x171   : > { %v436_v4 = vpop.eup %435 }
 0x172   : > { %v438_v6 = vpop.eup %437  ;;  %v314_v7 = vmul.f32 %v436_v4, %v311_v2 }
 0x173   : > { %v318_v9 = vmul.f32 %v438_v6, %v315_v3 }
 0x174   : > { %v320_v10 = vmul.f32 %v319_v5, %v314_v7 }
 0x175   : > { %v323_v11 = vmul.f32 %v322_v8, %v318_v9 }
 0x177   : > { %v324_v12 = vadd.f32 %v323_v11, %v320_v10 }
 0x179   : > { %325 = vst.msk [vmem:[#allocation7] sm:$0x1] %vm295_vm3, %v324_v12 }
 0x17a PF: > { %p415_p6 = scmp.eq.s32.totalorder %s513_s18, 2  ;;  %s478_s7 = smov [#allocation7]  }
 0x17b   : > { %s333_s8 = sshll.u32 %s478_s7, 4  ;;  %s334_s8 = int_to_ptr.vmem [resolvable:$true] %s333_s8 }
 0x17c   : > { %s439_s9 = scalar_lea.vmem %s334_s8, 16  ;;  %s445_s10 = scalar_lea.vmem %s334_s8, 32 }
 0x17d   : > { %p440_p7 = scmp.ne.s32.totalorder %s334_s8, %s439_s9  ;;  %p446_p10 = scmp.lt.s32.totalorder %s334_s8, %s334_s8 }
 0x17e   : > { %p447_p11 = scmp.lt.s32.totalorder %s445_s10, %s439_s9 }
 0x17f   : > { %p441_p8 = pnand %p440_p7, %p415_p6 }
 0x180   : > { %p448_p12 = por %p447_p11, %p446_p10 }
 0x181   : > { %p442_p9 = pneg %p441_p8 }
 0x183   : > { %p449_p13 = pnand %p448_p12, %p442_p9 }
 0x185   : > { %452 = shalt.err (!%p449_p13)
}
 0x186   : > { %412 = dma.vmem_to_hbm [thread:$0]  (%p415_p6), %s334_s8, 16, %s568_s4, [#allocation8]  }
 0x187   : > { %468 = dma.done.wait (%p415_p6), [#allocation8], 16  }
 0x188   : > { %470 = vsyncadd (%p415_p6), [#allocation8], 4294967280 }
 0x189 PF: > { %s16_s17 = sadd.s32 1, %s473_s17  }
 0x18a   : > { %p13_p0 = scmp.ge.s32.totalorder %s16_s17, 5  }
 0x18c   :  { %15 = sbr.rel (!%p13_p0) target bundleno = 3 (0x3), region = 77 }
 0x191   :  { %346 = vsyncpa [#allocation8], 1 }
 0x192   :  { %348 = vsyncpa [#allocation8 + $0x1], 1 }

</bundles_post_ra>
